<compile_context>
chip_gen: v5e
topology: v5e:2x2
jax: 0.10.0
libtpu: 0.0.40
codegen_flags: <defaults>
</compile_context>

<pallas_src>
import jax
import jax.numpy as jnp
from jax.experimental import pallas as pl
from jax.experimental.pallas import tpu as pltpu


# ----------------------------------------------------------------------------
# Fused kernel: normalize + dense1 + ReLU + grouped dense (one chunk of groups).
# ----------------------------------------------------------------------------
def _mlp_embedding_kernel(x_ref, w1_ref, b1_ref, w2_ref, b2_ref, out_ref):
    x = x_ref[...]                                            # (B, E) f32

    # F.normalize(a, p=2, dim=1): a / max(||a||_2, 1e-12).
    # Recomputed per chunk (B*E flops, negligible) so chunks stay independent
    # and the grid axis can be "parallel" (v7x megacore).
    nrm = jnp.sqrt(jnp.sum(x * x, axis=-1, keepdims=True))
    xn = x / jnp.maximum(nrm, 1e-12)

    # conv1 (1x1 Conv1d == dense): this chunk's slice of the mid features.
    h = jnp.dot(xn, w1_ref[...], preferred_element_type=jnp.float32) + b1_ref[...]
    h = jnp.maximum(h, 0.0)                                   # ReLU
    # TODO(synk): nn.Dropout(p=0.5) before conv2 is identity at inference.

    # conv2 (grouped 1x1 Conv1d) for this chunk of groups, as one dense matmul
    # against the per-chunk block-diagonal weight.
    o = jnp.dot(h, w2_ref[0], preferred_element_type=jnp.float32) + b2_ref[...]
    out_ref[...] = o.astype(out_ref.dtype)


# ----------------------------------------------------------------------------
# Wrapper: parameter re-layout + pallas_call.
# ----------------------------------------------------------------------------
def _pick_groups_per_chunk(groups, cg, out_g):
    """Smallest divisor of `groups` whose chunk is 128-lane dense on both the
    mid (input) and out sides; fall back to a single full-extent chunk."""
    for cand in range(1, groups):
        if groups % cand:
            continue
        if (cand * out_g) % 128 == 0 and (cand * cg) % 128 == 0:
            return cand
    return groups


def _build_blockdiag_w2(w2, groups, gpc):
    """w2: (out_features, mid/groups) PyTorch grouped-conv weight ->
    (num_chunks, gpc*cg, gpc*out_g) per-chunk block-diagonal matrices."""
    out_features, cg = w2.shape
    out_g = out_features // groups
    num_chunks = groups // gpc
    w23 = w2.reshape(groups, out_g, cg)                 # (G, out_g, cg)
    w2t = jnp.transpose(w23, (0, 2, 1))                 # (G, cg, out_g)
    w2c = w2t.reshape(num_chunks, gpc, cg, out_g)       # (n, g, c, o)
    eye = jnp.eye(gpc, dtype=w2.dtype)                  # (g, h)
    w2bd = jnp.einsum('ngco,gh->ngcho', w2c, eye)       # (n, g, c, h, o)
    return w2bd.reshape(num_chunks, gpc * cg, gpc * out_g)


def mlp_embedding_forward(a, a_len=None, *, params, groups=64):
    """a: (B, E) float32 -> (B, out_features) float32.  a_len is unused."""
    del a_len                                            # unused by MLPEmbedding
    w1, b1, w2, b2 = params                              # PyTorch layouts:
    # w1: (mid, E), b1: (mid,), w2: (out, mid//groups), b2: (out,)
    B, E = a.shape
    mid = w1.shape[0]
    out_features = w2.shape[0]
    cg = w2.shape[1]
    out_g = out_features // groups
    assert mid % groups == 0 and out_features % groups == 0 and mid // groups == cg

    gpc = _pick_groups_per_chunk(groups, cg, out_g)      # groups per chunk
    num_chunks = groups // gpc
    mid_chunk = gpc * cg
    out_chunk = gpc * out_g

    # One-time parameter re-layout (outside the kernel).
    w1t = jnp.transpose(w1)                              # (E, mid)
    b1_2 = b1.reshape(1, mid)
    w2bd = _build_blockdiag_w2(w2, groups, gpc)          # (num_chunks, mid_chunk, out_chunk)
    b2_2 = b2.reshape(1, out_features)

    return pl.pallas_call(
        _mlp_embedding_kernel,
        out_shape=jax.ShapeDtypeStruct((B, out_features), a.dtype),
        grid_spec=pltpu.PrefetchScalarGridSpec(
            num_scalar_prefetch=0,
            grid=(num_chunks,),
            in_specs=[
                pl.BlockSpec((B, E), lambda i: (0, 0)),                       # x (resident)
                pl.BlockSpec((E, mid_chunk), lambda i: (0, i)),               # W1^T chunk
                pl.BlockSpec((1, mid_chunk), lambda i: (0, i)),               # b1 chunk
                pl.BlockSpec((1, mid_chunk, out_chunk), lambda i: (i, 0, 0)), # W2 blockdiag
                pl.BlockSpec((1, out_chunk), lambda i: (0, i)),               # b2 chunk
            ],
            out_specs=pl.BlockSpec((B, out_chunk), lambda i: (0, i)),
        ),
        compiler_params=pltpu.CompilerParams(
            dimension_semantics=("parallel",)),          # chunks are independent
    )(a, w1t, b1_2, w2bd, b2_2)


# ----------------------------------------------------------------------------
# Pure-JAX reference (mirrors the PyTorch module) for validation.
# ----------------------------------------------------------------------------
def _forward_ref(a, params, groups):
    w1, b1, w2, b2 = params
    nrm = jnp.sqrt(jnp.sum(a * a, axis=1, keepdims=True))
    x = a / jnp.maximum(nrm, 1e-12)                      # F.normalize(a, p=2)
    h = jnp.maximum(x @ w1.T + b1[None, :], 0.0)         # conv1 + ReLU
    out_features = b2.shape[0]
    out_g = out_features // groups
    cg = w2.shape[1]
    h3 = h.reshape(a.shape[0], groups, cg)
    w23 = w2.reshape(groups, out_g, cg)
    o = jnp.einsum('bgc,goc->bgo', h3, w23) + b2.reshape(groups, out_g)[None]
    return o.reshape(a.shape[0], out_features)           # grouped conv2


if __name__ == "__main__":
    B = 8                       # >= 8 sublanes (perf feedback); any B works
    embedding_features = 256    # input feature size (lane-dense choice)
    mid_features = 4096         # GroupMLP(mid_features=4096, ...)
    embedding_size = 1024       # default embedding_size
    groups = 64                 # GroupMLP(groups=64)

    key = jax.random.PRNGKey(0)
    ka, k1, k2, k3, k4 = jax.random.split(key, 5)
    a = jax.random.normal(ka, (B, embedding_features), jnp.float32)
    w1 = 0.05 * jax.random.normal(k1, (mid_features, embedding_features), jnp.float32)
    b1 = 0.01 * jax.random.normal(k2, (mid_features,), jnp.float32)
    w2 = 0.05 * jax.random.normal(
        k3, (embedding_size, mid_features // groups), jnp.float32)
    b2 = 0.01 * jax.random.normal(k4, (embedding_size,), jnp.float32)
    params = (w1, b1, w2, b2)

    out = mlp_embedding_forward(a, None, params=params, groups=groups)
    out = jax.block_until_ready(out)
    assert out.shape == (B, embedding_size), out.shape

    ref = jax.block_until_ready(_forward_ref(a, params, groups))
    err = float(jnp.max(jnp.abs(out - ref)))
    assert jnp.allclose(out, ref, atol=2e-3, rtol=2e-3), err

    print("KERNEL_OK")
</pallas_src>

<mosaic_0001>
module attributes {stable_mosaic.version = 11 : i64} {
  func.func @_mlp_embedding_kernel(%arg0: i32, %arg1: memref<8x256xf32, #tpu.memory_space<vmem>>, %arg2: memref<256x512xf32, #tpu.memory_space<vmem>>, %arg3: memref<1x512xf32, #tpu.memory_space<vmem>>, %arg4: memref<1x512x128xf32, #tpu.memory_space<vmem>>, %arg5: memref<1x128xf32, #tpu.memory_space<vmem>>, %arg6: memref<8x128xf32, #tpu.memory_space<vmem>>) attributes {dimension_semantics = [#tpu.dimension_semantics<parallel>], iteration_bounds = array<i64: 8>, scalar_prefetch = 0 : i64, scratch_operands = 0 : i64, tpu.core_type = #tpu.core_type<tc>, window_params = [{pipeline_mode = #tpu.pipeline_mode<synchronous>, transform_indices = @transform_0, window_bounds = array<i64: 8, 256>}, {transform_indices = @transform_1, window_bounds = array<i64: 256, 512>}, {transform_indices = @transform_2, window_bounds = array<i64: 1, 512>}, {transform_indices = @transform_3, window_bounds = array<i64: 1, 512, 128>}, {transform_indices = @transform_4, window_bounds = array<i64: 1, 128>}, {transform_indices = @transform_5, window_bounds = array<i64: 8, 128>}]} {
    %c0 = arith.constant 0 : index
    %c0_0 = arith.constant 0 : index
    %0 = vector.load %arg1[%c0, %c0_0] : memref<8x256xf32, #tpu.memory_space<vmem>>, vector<8x256xf32>
    %1 = arith.mulf %0, %0 : vector<8x256xf32>
    %cst = arith.constant dense<0.000000e+00> : vector<8xf32>
    %2 = vector.multi_reduction <add>, %1, %cst [1] : vector<8x256xf32> to vector<8xf32>
    %3 = vector.shape_cast %2 : vector<8xf32> to vector<8x1xf32>
    %4 = math.sqrt %3 : vector<8x1xf32>
    %cst_1 = arith.constant 9.99999996E-13 : f32
    %5 = vector.broadcast %cst_1 : f32 to vector<8x1xf32>
    %6 = arith.maximumf %4, %5 : vector<8x1xf32>
    %7 = vector.broadcast %6 : vector<8x1xf32> to vector<8x256xf32>
    %8 = arith.divf %0, %7 : vector<8x256xf32>
    %c0_2 = arith.constant 0 : index
    %c0_3 = arith.constant 0 : index
    %9 = vector.load %arg2[%c0_2, %c0_3] : memref<256x512xf32, #tpu.memory_space<vmem>>, vector<256x512xf32>
    %cst_4 = arith.constant dense<0.000000e+00> : vector<8x512xf32>
    %10 = tpu.matmul %8, %9, %cst_4 {dimension_numbers = #tpu.dot_dimension_numbers<[1], [0], [0], [1], [0, 0, 1, 1], [], []>} : vector<8x256xf32>, vector<256x512xf32>, vector<8x512xf32> -> vector<8x512xf32>
    %c0_5 = arith.constant 0 : index
    %c0_6 = arith.constant 0 : index
    %11 = vector.load %arg3[%c0_5, %c0_6] : memref<1x512xf32, #tpu.memory_space<vmem>>, vector<1x512xf32>
    %12 = vector.broadcast %11 : vector<1x512xf32> to vector<8x512xf32>
    %13 = arith.addf %10, %12 : vector<8x512xf32>
    %cst_7 = arith.constant 0.000000e+00 : f32
    %14 = vector.broadcast %cst_7 : f32 to vector<8x512xf32>
    %15 = arith.maximumf %13, %14 : vector<8x512xf32>
    %c0_8 = arith.constant 0 : index
    %c0_9 = arith.constant 0 : index
    %c0_10 = arith.constant 0 : index
    %16 = vector.load %arg4[%c0_8, %c0_9, %c0_10] : memref<1x512x128xf32, #tpu.memory_space<vmem>>, vector<1x512x128xf32>
    %17 = vector.shape_cast %16 : vector<1x512x128xf32> to vector<512x128xf32>
    %cst_11 = arith.constant dense<0.000000e+00> : vector<8x128xf32>
    %18 = tpu.matmul %15, %17, %cst_11 {dimension_numbers = #tpu.dot_dimension_numbers<[1], [0], [0], [1], [0, 0, 1, 1], [], []>} : vector<8x512xf32>, vector<512x128xf32>, vector<8x128xf32> -> vector<8x128xf32>
    %c0_12 = arith.constant 0 : index
    %c0_13 = arith.constant 0 : index
    %19 = vector.load %arg5[%c0_12, %c0_13] : memref<1x128xf32, #tpu.memory_space<vmem>>, vector<1x128xf32>
    %20 = vector.broadcast %19 : vector<1x128xf32> to vector<8x128xf32>
    %21 = arith.addf %18, %20 : vector<8x128xf32>
    %c0_14 = arith.constant 0 : index
    %c0_15 = arith.constant 0 : index
    %22 = vector.load %arg6[%c0_14, %c0_15] : memref<8x128xf32, #tpu.memory_space<vmem>>, vector<8x128xf32>
    tpu.vector_store %arg6[%c0_14, %c0_15], %21 {strides = array<i32>} : memref<8x128xf32, #tpu.memory_space<vmem>>, vector<8x128xf32>,
    return
  }
  func.func @transform_0(%arg0: i32) -> (i32, i32) {
    %c0_i32 = arith.constant 0 : i32
    %c0_i32_0 = arith.constant 0 : i32
    %c0_i32_1 = arith.constant 0 : i32
    return %c0_i32, %c0_i32_0 : i32, i32
  }
  func.func @transform_1(%arg0: i32) -> (i32, i32) {
    %c0_i32 = arith.constant 0 : i32
    %c0_i32_0 = arith.constant 0 : i32
    return %c0_i32, %arg0 : i32, i32
  }
  func.func @transform_2(%arg0: i32) -> (i32, i32) {
    %c0_i32 = arith.constant 0 : i32
    %c0_i32_0 = arith.constant 0 : i32
    return %c0_i32, %arg0 : i32, i32
  }
  func.func @transform_3(%arg0: i32) -> (i32, i32, i32) {
    %c0_i32 = arith.constant 0 : i32
    %c0_i32_0 = arith.constant 0 : i32
    %c0_i32_1 = arith.constant 0 : i32
    return %arg0, %c0_i32, %c0_i32_0 : i32, i32, i32
  }
  func.func @transform_4(%arg0: i32) -> (i32, i32) {
    %c0_i32 = arith.constant 0 : i32
    %c0_i32_0 = arith.constant 0 : i32
    return %c0_i32, %arg0 : i32, i32
  }
  func.func @transform_5(%arg0: i32) -> (i32, i32) {
    %c0_i32 = arith.constant 0 : i32
    %c0_i32_0 = arith.constant 0 : i32
    return %c0_i32, %arg0 : i32, i32
  }
}

</mosaic_0001>

<bundles_post_ra>
// kernel: tpu_custom_call.1
= control target key start
LH: loop header
LB: loop body
LE: loop exit
PB: predicated region body
PF: predicated region fallthrough
CT: control target
= control target key end

     0   :  { %s1821_s0 = inlined_call_operand.hbm [shape: f32[8,256], index: 0, kind: input, shape index: {}]   ;;  %s1822_s1 = inlined_call_operand.hbm [shape: f32[256,4096], index: 1, kind: input, shape index: {}]   ;;  %s1823_s2 = inlined_call_operand.hbm [shape: f32[1,4096], index: 2, kind: input, shape index: {}]   ;;  %s1824_s3 = inlined_call_operand.hbm [shape: f32[8,512,128], index: 3, kind: input, shape index: {}]   ;;  %s1825_s4 = inlined_call_operand.hbm [shape: f32[1,1024], index: 4, kind: input, shape index: {}]   ;;  %s1826_s5 = inlined_call_operand.hbm [shape: f32[8,1024], index: 5, kind: output, shape index: {}]  }
   0x1   :  { %1828 = sst [smem:[#allocation18_spill]] %s1821_s0 }
   0x2   :  { %1829 = sst [smem:[#allocation19_spill]] %s1822_s1 }
   0x3   :  { %1830 = sst [smem:[#allocation20_spill]] %s1824_s3 }
   0x4   :  { %10 = vsyncpa [#allocation3], 0 }
   0x5   :  { %11 = vsyncpa [#allocation6], 0 }
   0x6   :  { %13 = vsyncpa [#allocation6 + $0x1], 0 }
   0x7   :  { %14 = vsyncpa [#allocation9], 0 }
   0x8   :  { %16 = vsyncpa [#allocation9 + $0x1], 0 }
   0x9   :  { %17 = vsyncpa [#allocation4], 0 }
   0xa   :  { %19 = vsyncpa [#allocation4 + $0x1], 0  ;;  %s1384_s18 = smov 0   ;;  %s1386_s19 = smov 0  }
   0xb   :  { %s1388_s20 = smov 0   ;;  %s1390_s21 = smov 0  }
   0xc LB: > { %1831 = sst [smem:[#allocation16_spill]] %s1342_s20  ;;  %s1405_s22 = sadd.s32 1, %s1346_s21   ;;  %s1346_s21 = sphi %s1390_s21, %s1845_s21   ;;  %s1342_s20 = sphi %s1388_s20, %s1842_s20   ;;  %s1338_s19 = sphi %s1386_s19, %s1844_s19   ;;  %s1334_s18 = sphi %s1384_s18, %s1843_s18  }
   0xd   : > { %s53_s23 = sadd.s32 1, %s1342_s20  ;;  %s50_s24 = ssub.s32 %s1346_s21, %s1405_s22 }
   0xe   : > { %p60_p0 = scmp.ne.s32.totalorder %s1342_s20, %s1338_s19  ;;  %p51_p1 = scmp.eq.s32.totalorder %s50_s24, 0 }
   0xf   : > { %p61_p2 = scmp.eq.s32.totalorder %s1346_s21, 0  ;;  %p1076_p3 = scmp.lt.s32.totalorder %s1346_s21, 8 }
  0x10   : > { %s1415_s25 = scalar_select %p51_p1, %s1342_s20, %s53_s23  }
  0x11   : > { %p62_p4 = por %p61_p2, %p60_p0  ;;  %s206_s26 = sand.u32 1, %s1346_s21  }
  0x12   : > { %1832 = sst [smem:[#allocation17_spill]] %s1415_s25  ;;  %s1422_s27 = sand.u32 1, %s1342_s20  }
  0x13   : > { %s1020_s28 = sshll.u32 %s1422_s27, 10  ;;  %s1038_s29 = sshll.u32 %s1346_s21, 5 }
  0x14   : > { %s1833_s1 = sld [smem:[#allocation19_spill]]  ;;  %s210_s9 = scalar_lea.vmem [#allocation5], %s1020_s28 }
  0x15   : > { %s218_s10 = sshll.u32 %s210_s9, 4  ;;  %p1431_p5 = pnand %p1076_p3, %p62_p4  ;;  %s219_s10 = int_to_ptr.vmem [resolvable:$true] %s218_s10 }
  0x16   : > { %s1437_s12 = scalar_lea.sflag [#allocation6], %s206_s26 }
  0x17   : > { %p1126_p7 = pneg %p1431_p5 }
  0x1a   : > { %s215_s7 = scalar_lea.hbm %s1833_s1, %s1038_s29  ;;  %s1129_s17 = scalar_lea.hbm %s1833_s1, 8192 }
  0x1b   : > { %s216_s8 = sshll.u32 %s215_s7, 4  ;;  %s217_s8 = int_to_ptr.hbm [resolvable:$true] %s216_s8 }
  0x1c   : > { %s1122_s13 = sshra.s32 %s217_s8, 4  ;;  %s1123_s13 = int_to_ptr.hbm [resolvable:$true] %s1122_s13 }
  0x1d   : > { %s1124_s14 = scalar_lea.hbm %s1123_s13, 1024  ;;  %p1130_p10 = scmp.lt.s32.totalorder %s1123_s13, %s1833_s1 }
  0x1e   : > { %p1125_p6 = scmp.ne.s32.totalorder %s1123_s13, %s1124_s14  ;;  %p1131_p11 = scmp.lt.s32.totalorder %s1129_s17, %s1124_s14 }
  0x20   : > { %p1127_p8 = pnand %p1126_p7, %p1125_p6  ;;  %p1132_p12 = por %p1131_p11, %p1130_p10 }
  0x22   : > { %p1128_p9 = pneg %p1127_p8 }
  0x24   : > { %p1133_p13 = pnand %p1132_p12, %p1128_p9 }
  0x26   : > { %1136 = shalt.err (!%p1133_p13)
}
  0x27   : > { %s1348_s28 = smov 4096   ;;  %s1349_s29 = smov 512  }
  0x28   : > { %s1350_s30 = smov 32   ;;  %s1025_s6 = sshll.u32 %s1422_s27, 9 }
  0x29   : > { %1061 = dma.hbm_to_vmem [thread:$0]  (!%p1431_p5), %s217_s8, 16384, %s219_s10, %s1437_s12, %s1348_s28, %s1349_s29, %s1350_s30  }
  0x2a   : > { %s1039_s7 = sshll.u32 %s1346_s21, 9  ;;  %s1835_s3 = sld [smem:[#allocation20_spill]] }
  0x2b   : > { %s251_s16 = scalar_lea.vmem [#allocation8], %s1025_s6  ;;  %s1460_s23 = scalar_lea.sflag [#allocation9], %s206_s26 }
  0x2c   : > { %s259_s17 = sshll.u32 %s251_s16, 4  ;;  %s260_s17 = int_to_ptr.vmem [resolvable:$true] %s259_s17 }
  0x30   : > { %s256_s13 = scalar_lea.hbm %s1835_s3, %s1039_s7  ;;  %s1159_s28 = scalar_lea.hbm %s1835_s3, 4096 }
  0x31   : > { %s257_s14 = sshll.u32 %s256_s13, 4  ;;  %s258_s14 = int_to_ptr.hbm [resolvable:$true] %s257_s14 }
  0x32   : > { %s1152_s24 = sshra.s32 %s258_s14, 4  ;;  %s1153_s24 = int_to_ptr.hbm [resolvable:$true] %s1152_s24 }
  0x33   : > { %s1154_s1 = scalar_lea.hbm %s1153_s24, 512  ;;  %p1160_p4 = scmp.lt.s32.totalorder %s1153_s24, %s1835_s3 }
  0x34   : > { %p1155_p1 = scmp.ne.s32.totalorder %s1153_s24, %s1154_s1  ;;  %p1161_p6 = scmp.lt.s32.totalorder %s1159_s28, %s1154_s1 }
  0x36   : > { %p1157_p2 = pnand %p1155_p1, %p1126_p7  ;;  %p1162_p8 = por %p1161_p6, %p1160_p4 }
  0x38   : > { %p1158_p3 = pneg %p1157_p2 }
  0x3a   : > { %p1163_p9 = pnand %p1162_p8, %p1158_p3 }
  0x3c   : > { %1166 = shalt.err (!%p1163_p9)
}
  0x3d   : > { %s1351_s26 = smov 128   ;;  %s1352_s6 = smov 8  }
  0x3e   : > { %1067 = dma.hbm_to_vmem [thread:$0]  (!%p1431_p5), %s258_s14, 8192, %s260_s17, %s1460_s23, %s1351_s26, %s1351_s26, %s1352_s6  }
  0x3f   : > { %s1475_s7 = sadd.s32 4294967295, %s1346_s21   ;;  %s1016_s1 = sadd.s32 4294967294, %s1346_s21  }
  0x40   : > { %p66_p10 = scmp.ne.s32.totalorder %s1338_s19, %s1334_s18  ;;  %p67_p11 = scmp.eq.s32.totalorder %s1475_s7, 0 }
  0x41   : > { %p168_p12 = scmp.eq.s32.totalorder %s1475_s7, 7  ;;  %p174_p13 = scmp.eq.s32.totalorder %s1016_s1, 7 }
  0x42   : > { %p1484_p1 = por %p67_p11, %p66_p10  ;;  %p1017_p2 = scmp.ge.s32.totalorder %s1346_s21, 1 }
  0x43   : > { %p1492_p3 = por %p168_p12, %p60_p0  ;;  %p1496_p4 = por %p174_p13, %p66_p10 }
  0x44   : > { %p181_p6 = scmp.lt.s32.totalorder %s1346_s21, 9  ;;  %s1839_s0 = sld [smem:[#allocation18_spill]] }
  0x45   : > { %s1353_s8 = smov [#allocation2]   ;;  %s1023_s28 = sshll.u32 %s1422_s27, 2 }
  0x46   : > { %p1504_p8 = pnand %p1017_p2, %p181_p6  ;;  %s195_s10 = sshll.u32 %s1353_s8, 4  ;;  %s196_s10 = int_to_ptr.vmem [resolvable:$true] %s195_s10 }
  0x47   : > { %s1024_s29 = sshll.u32 %s1346_s21, 2  ;;  %s232_s14 = scalar_lea.vmem [#allocation7], %s1023_s28 }
  0x48   : > { %p1054_p0 = pneg %p1504_p8  ;;  %s236_s6 = scalar_lea.hbm %s1823_s2, %s1024_s29 }
  0x49   : > { %s238_s1 = sshll.u32 %s236_s6, 4  ;;  %s240_s16 = sshll.u32 %s232_s14, 4  ;;  %s239_s1 = int_to_ptr.hbm [resolvable:$true] %s238_s1  ;;  %s241_s16 = int_to_ptr.vmem [resolvable:$true] %s240_s16 }
  0x4a   : > { %s193_s17 = sshll.u32 %s1839_s0, 4  ;;  %p1055_p9 = pnand %p1054_p0, %p67_p11  ;;  %s194_s17 = int_to_ptr.hbm [resolvable:$true] %s193_s17 }
  0x4b   : > { %s1212_s0 = sshra.s32 %s239_s1, 4  ;;  %s1219_s20 = scalar_lea.hbm %s1823_s2, 32  ;;  %s1213_s0 = int_to_ptr.hbm [resolvable:$true] %s1212_s0 }
  0x4c   : > { %1057 = dma.hbm_to_vmem [thread:$0]  (!%p1055_p9), %s194_s17, 256, %s196_s10, [#allocation3]  }
  0x4d   : > { %s1214_s8 = scalar_lea.hbm %s1213_s0, 4  ;;  %p1220_p2 = scmp.lt.s32.totalorder %s1213_s0, %s1823_s2 }
  0x4e   : > { %p1215_p10 = scmp.ne.s32.totalorder %s1213_s0, %s1214_s8  ;;  %p1221_p6 = scmp.lt.s32.totalorder %s1219_s20, %s1214_s8 }
  0x50   : > { %p1217_p12 = pnand %p1215_p10, %p1126_p7  ;;  %p1222_p0 = por %p1221_p6, %p1220_p2 }
  0x52   : > { %p1218_p13 = pneg %p1217_p12 }
  0x54   : > { %p1223_p9 = pnand %p1222_p0, %p1218_p13 }
  0x56   : > { %1226 = shalt.err (!%p1223_p9)
}
  0x57   : > { %1064 = dma.hbm_to_vmem [thread:$0]  (!%p1431_p5), %s239_s1, 64, %s241_s16, %s1437_s12  }
  0x58   : > { %s275_s3 = scalar_lea.hbm %s1825_s4, %s1346_s21  ;;  %s272_s25 = scalar_lea.vmem [#allocation10], %s1422_s27 }
  0x59   : > { %s279_s28 = sshll.u32 %s272_s25, 4  ;;  %s277_s26 = sshll.u32 %s275_s3, 4  ;;  %s280_s28 = int_to_ptr.vmem [resolvable:$true] %s279_s28  ;;  %s278_s26 = int_to_ptr.hbm [resolvable:$true] %s277_s26 }
  0x5a   : > { %s1242_s0 = sshra.s32 %s278_s26, 4  ;;  %s1249_s12 = scalar_lea.hbm %s1825_s4, 8  ;;  %s1243_s0 = int_to_ptr.hbm [resolvable:$true] %s1242_s0 }
  0x5b   : > { %s1244_s20 = scalar_lea.hbm %s1243_s0, 1  ;;  %p1250_p2 = scmp.lt.s32.totalorder %s1243_s0, %s1825_s4 }
  0x5c   : > { %p1245_p10 = scmp.ne.s32.totalorder %s1243_s0, %s1244_s20  ;;  %p1251_p6 = scmp.lt.s32.totalorder %s1249_s12, %s1244_s20 }
  0x5e   : > { %p1247_p12 = pnand %p1245_p10, %p1126_p7  ;;  %p1252_p0 = por %p1251_p6, %p1250_p2 }
  0x60   : > { %p1248_p13 = pneg %p1247_p12 }
  0x62   : > { %p1253_p9 = pnand %p1252_p0, %p1248_p13 }
  0x64   : > { %1256 = shalt.err (!%p1253_p9)
}
  0x65   : > { %1070 = dma.hbm_to_vmem [thread:$0]  (!%p1431_p5), %s278_s26, 16, %s280_s28, %s1460_s23  }
  0x66   : > { %288 = sbr.rel (%p1504_p8) target bundleno = 563 (0x233), region = 40 }
  0x6b   : > { %1317 = dma.done.wait (%p67_p11), [#allocation3], 256  }
  0x6c   : > { %1319 = vsyncadd (%p67_p11), [#allocation3], 4294967040  ;;  %s295_s27 = sand.u32 1, %s1475_s7   ;;  %s1554_s8 = sand.u32 1, %s1338_s19  }
  0x6d   : > { %s1030_s30 = sshll.u32 %s1554_s8, 10  ;;  %s296_s11 = scalar_lea.sflag [#allocation6], %s295_s27 }
  0x6e   : > { %s1557_s29 = scalar_lea.vmem [#allocation5], %s1030_s30 }
  0x6f   : > { %1321 = dma.done.wait (%p1484_p1), %s296_s11, 16448  }
  0x70   : > { %1323 = vsyncadd (%p1484_p1), %s296_s11, 4294950848  ;;  %s1031_s23 = sshll.u32 %s1554_s8, 2  ;;  %s1032_s24 = sshll.u32 %s1554_s8, 9 }
  0x71   : > { %s1565_s17 = scalar_lea.vmem [#allocation7], %s1031_s23  ;;  %s316_s10 = scalar_lea.sflag [#allocation9], %s295_s27 }
  0x72   : > { %s1567_s3 = scalar_lea.vmem [#allocation8], %s1032_s24 }
  0x73   : > { %1325 = dma.done.wait (%p1484_p1), %s316_s10, 8208  }
  0x74   : > { %1327 = vsyncadd (%p1484_p1), %s316_s10, 4294959088  ;;  %v1573_v0 = vld [vmem:[#allocation2] sm:$0xff]  ;;  %v1575_v1 = vld [vmem:[#allocation2 + $0x8] sm:$0xff]  ;;  %s328_s9 = scalar_lea.vmem [#allocation10], %s1554_s8  ;;  %s1033_s25 = sshll.u32 %s1554_s8, 3 }
  0x75   : > { %v468_v2 = vld [vmem:[%s1557_s29 + $0x1e0] sm:$0xff]  ;;  %v374_v3 = vmul.f32 %v1573_v0, %v1573_v0  ;;  %v375_v4 = vmul.f32 %v1575_v1, %v1575_v1  ;;  %v469_v6 = vld [vmem:[%s1557_s29 + $0x1e8] sm:$0xff]  ;;  %s1035_s28 = sshll.u32 %s1475_s7, 3  ;;  %s369_s6 = scalar_lea.vmem [#allocation11], %s1033_s25 }
  0x76   : > { %546 = vmatpush.msra.mxu0 %v468_v2  ;;  %v532_v5 = vld [vmem:[%s1557_s29 + $0x3e0] sm:$0xff]  ;;  %v533_v7 = vld [vmem:[%s1557_s29 + $0x3e8] sm:$0xff]  ;;  %586 = vmatpush.msra.mxu2 %v469_v6  ;;  %s870_s20 = scalar_lea.hbm %s1826_s5, %s1035_s28  ;;  %s872_s14 = sshll.u32 %s369_s6, 4  ;;  %s873_s14 = int_to_ptr.vmem [resolvable:$true] %s872_s14 }
  0x77   : > { %566 = vmatpush.msra.mxu1 %v532_v5  ;;  %v464_v8 = vld [vmem:[%s1557_s29 + $0x1c0] sm:$0xff]  ;;  %v465_v10 = vld [vmem:[%s1557_s29 + $0x1c8] sm:$0xff]  ;;  %v376_v11 = vadd.f32 %v375_v4, %v374_v3  ;;  %606 = vmatpush.msra.mxu3 %v533_v7  ;;  %v470_v7 = vld [vmem:[%s1557_s29 + $0x1f0] sm:$0xff]  ;;  %s874_s12 = sshll.u32 %s870_s20, 4  ;;  %s860_s1 = scalar_lea.sflag [#allocation4], %s1554_s8  ;;  %s875_s12 = int_to_ptr.hbm [resolvable:$true] %s874_s12 }
  0x78   : > { %v528_v9 = vld [vmem:[%s1557_s29 + $0x3c0] sm:$0xff]  ;;  %547 = vmatpush.msra.mxu0 %v464_v8  ;;  %v529_v12 = vld [vmem:[%s1557_s29 + $0x3c8] sm:$0xff]  ;;  %587 = vmatpush.msra.mxu2 %v465_v10  ;;  %v534_v8 = vld [vmem:[%s1557_s29 + $0x3f0] sm:$0xff]  ;;  %s1286_s7 = sshra.s32 %s875_s12, 4  ;;  %s1292_s11 = scalar_lea.hbm %s1826_s5, 64  ;;  %s1287_s7 = int_to_ptr.hbm [resolvable:$true] %s1286_s7 }
  0x79   : > { %v460_v13 = vld [vmem:[%s1557_s29 + $0x1a0] sm:$0xff]  ;;  %567 = vmatpush.msra.mxu1 %v528_v9  ;;  %v461_v15 = vld [vmem:[%s1557_s29 + $0x1a8] sm:$0xff]  ;;  %377 = vadd.xlane.f32.xlu0 %v376_v11  ;;  %v471_v9 = vld [vmem:[%s1557_s29 + $0x1f8] sm:$0xff]  ;;  %s1288_s16 = scalar_lea.hbm %s1287_s7, 8  ;;  %p1293_p1 = scmp.lt.s32.totalorder %s1287_s7, %s1826_s5 }
  0x7a   : > { %v524_v14 = vld [vmem:[%s1557_s29 + $0x3a0] sm:$0xff]  ;;  %v525_v16 = vld [vmem:[%s1557_s29 + $0x3a8] sm:$0xff]  ;;  %607 = vmatpush.msra.mxu3 %v529_v12  ;;  %548 = vmatpush.msra.mxu0 %v460_v13  ;;  %v535_v10 = vld [vmem:[%s1557_s29 + $0x3f8] sm:$0xff]  ;;  %p1289_p5 = scmp.ne.s32.totalorder %s1287_s7, %s1288_s16  ;;  %p1294_p8 = scmp.lt.s32.totalorder %s1292_s11, %s1288_s16 }
  0x7b   : > { %v456_v17 = vld [vmem:[%s1557_s29 + $0x180] sm:$0xff]  ;;  %568 = vmatpush.msra.mxu1 %v524_v14  ;;  %v457_v19 = vld [vmem:[%s1557_s29 + $0x188] sm:$0xff]  ;;  %588 = vmatpush.msra.mxu2 %v461_v15  ;;  %v466_v11 = vld [vmem:[%s1557_s29 + $0x1d0] sm:$0xff] }
  0x7c   : > { %v520_v18 = vld [vmem:[%s1557_s29 + $0x380] sm:$0xff]  ;;  %v521_v20 = vld [vmem:[%s1557_s29 + $0x388] sm:$0xff]  ;;  %608 = vmatpush.msra.mxu3 %v525_v16  ;;  %549 = vmatpush.msra.mxu0 %v456_v17  ;;  %v530_v12 = vld [vmem:[%s1557_s29 + $0x3d0] sm:$0xff]  ;;  %p1290_p7 = pnand %p1289_p5, %p1492_p3  ;;  %p1295_p10 = por %p1294_p8, %p1293_p1 }
  0x7d   : > { %v452_v21 = vld [vmem:[%s1557_s29 + $0x160] sm:$0xff]  ;;  %569 = vmatpush.msra.mxu1 %v520_v18  ;;  %v453_v23 = vld [vmem:[%s1557_s29 + $0x168] sm:$0xff]  ;;  %589 = vmatpush.msra.mxu2 %v457_v19  ;;  %v467_v13 = vld [vmem:[%s1557_s29 + $0x1d8] sm:$0xff] }
  0x7e   : > { %v516_v22 = vld [vmem:[%s1557_s29 + $0x360] sm:$0xff]  ;;  %v517_v24 = vld [vmem:[%s1557_s29 + $0x368] sm:$0xff]  ;;  %609 = vmatpush.msra.mxu3 %v521_v20  ;;  %550 = vmatpush.msra.mxu0 %v452_v21  ;;  %v531_v14 = vld [vmem:[%s1557_s29 + $0x3d8] sm:$0xff]  ;;  %p1291_p11 = pneg %p1290_p7 }
  0x7f   : > { %v448_v25 = vld [vmem:[%s1557_s29 + $0x140] sm:$0xff]  ;;  %570 = vmatpush.msra.mxu1 %v516_v22  ;;  %v449_v27 = vld [vmem:[%s1557_s29 + $0x148] sm:$0xff]  ;;  %590 = vmatpush.msra.mxu2 %v453_v23  ;;  %v462_v15 = vld [vmem:[%s1557_s29 + $0x1b0] sm:$0xff] }
  0x80   : > { %v512_v26 = vld [vmem:[%s1557_s29 + $0x340] sm:$0xff]  ;;  %v513_v28 = vld [vmem:[%s1557_s29 + $0x348] sm:$0xff]  ;;  %610 = vmatpush.msra.mxu3 %v517_v24  ;;  %551 = vmatpush.msra.mxu0 %v448_v25  ;;  %v526_v16 = vld [vmem:[%s1557_s29 + $0x3b0] sm:$0xff]  ;;  %p1296_p12 = pnand %p1295_p10, %p1291_p11 }
  0x81   : > { %571 = vmatpush.msra.mxu1 %v512_v26  ;;  %591 = vmatpush.msra.mxu2 %v449_v27  ;;  %v444_v29 = vld [vmem:[%s1557_s29 + $0x120] sm:$0xff]  ;;  %v445_v31 = vld [vmem:[%s1557_s29 + $0x128] sm:$0xff]  ;;  %v463_v17 = vld [vmem:[%s1557_s29 + $0x1b8] sm:$0xff] }
  0x82   : > { %611 = vmatpush.msra.mxu3 %v513_v28  ;;  %v508_v30 = vld [vmem:[%s1557_s29 + $0x320] sm:$0xff]  ;;  %552 = vmatpush.msra.mxu0 %v444_v29  ;;  %v509_v32 = vld [vmem:[%s1557_s29 + $0x328] sm:$0xff]  ;;  %v527_v18 = vld [vmem:[%s1557_s29 + $0x3b8] sm:$0xff] }
  0x83   : > { %572 = vmatpush.msra.mxu1 %v508_v30  ;;  %592 = vmatpush.msra.mxu2 %v445_v31  ;;  %v440_v33 = vld [vmem:[%s1557_s29 + $0x100] sm:$0xff]  ;;  %v441_v35 = vld [vmem:[%s1557_s29 + $0x108] sm:$0xff]  ;;  %v458_v19 = vld [vmem:[%s1557_s29 + $0x190] sm:$0xff] }
  0x84   : > { %612 = vmatpush.msra.mxu3 %v509_v32  ;;  %v504_v34 = vld [vmem:[%s1557_s29 + $0x300] sm:$0xff]  ;;  %553 = vmatpush.msra.mxu0 %v440_v33  ;;  %v505_v36 = vld [vmem:[%s1557_s29 + $0x308] sm:$0xff]  ;;  %v522_v20 = vld [vmem:[%s1557_s29 + $0x390] sm:$0xff] }
  0x85   : > { %573 = vmatpush.msra.mxu1 %v504_v34  ;;  %593 = vmatpush.msra.mxu2 %v441_v35  ;;  %v436_v37 = vld [vmem:[%s1557_s29 + $0xe0] sm:$0xff]  ;;  %v437_v39 = vld [vmem:[%s1557_s29 + $0xe8] sm:$0xff]  ;;  %v459_v21 = vld [vmem:[%s1557_s29 + $0x198] sm:$0xff] }
  0x86   : > { %613 = vmatpush.msra.mxu3 %v505_v36  ;;  %v500_v38 = vld [vmem:[%s1557_s29 + $0x2e0] sm:$0xff]  ;;  %554 = vmatpush.msra.mxu0 %v436_v37  ;;  %v501_v40 = vld [vmem:[%s1557_s29 + $0x2e8] sm:$0xff]  ;;  %v523_v22 = vld [vmem:[%s1557_s29 + $0x398] sm:$0xff] }
  0x87   : > { %574 = vmatpush.msra.mxu1 %v500_v38  ;;  %594 = vmatpush.msra.mxu2 %v437_v39  ;;  %v432_v41 = vld [vmem:[%s1557_s29 + $0xc0] sm:$0xff]  ;;  %v433_v43 = vld [vmem:[%s1557_s29 + $0xc8] sm:$0xff]  ;;  %v454_v23 = vld [vmem:[%s1557_s29 + $0x170] sm:$0xff] }
  0x88   : > { %614 = vmatpush.msra.mxu3 %v501_v40  ;;  %v496_v42 = vld [vmem:[%s1557_s29 + $0x2c0] sm:$0xff]  ;;  %555 = vmatpush.msra.mxu0 %v432_v41  ;;  %v497_v44 = vld [vmem:[%s1557_s29 + $0x2c8] sm:$0xff]  ;;  %v518_v24 = vld [vmem:[%s1557_s29 + $0x370] sm:$0xff] }
  0x89   : > { %575 = vmatpush.msra.mxu1 %v496_v42  ;;  %595 = vmatpush.msra.mxu2 %v433_v43  ;;  %v428_v45 = vld [vmem:[%s1557_s29 + $0xa0] sm:$0xff]  ;;  %v429_v47 = vld [vmem:[%s1557_s29 + $0xa8] sm:$0xff]  ;;  %v455_v25 = vld [vmem:[%s1557_s29 + $0x178] sm:$0xff] }
  0x8a   : > { %615 = vmatpush.msra.mxu3 %v497_v44  ;;  %v492_v46 = vld [vmem:[%s1557_s29 + $0x2a0] sm:$0xff]  ;;  %556 = vmatpush.msra.mxu0 %v428_v45  ;;  %v493_v48 = vld [vmem:[%s1557_s29 + $0x2a8] sm:$0xff]  ;;  %v519_v26 = vld [vmem:[%s1557_s29 + $0x378] sm:$0xff] }
  0x8b   : > { %576 = vmatpush.msra.mxu1 %v492_v46  ;;  %596 = vmatpush.msra.mxu2 %v429_v47  ;;  %v424_v49 = vld [vmem:[%s1557_s29 + $0x80] sm:$0xff]  ;;  %v425_v51 = vld [vmem:[%s1557_s29 + $0x88] sm:$0xff]  ;;  %v450_v27 = vld [vmem:[%s1557_s29 + $0x150] sm:$0xff] }
  0x8c   : > { %616 = vmatpush.msra.mxu3 %v493_v48  ;;  %v488_v50 = vld [vmem:[%s1557_s29 + $0x280] sm:$0xff]  ;;  %557 = vmatpush.msra.mxu0 %v424_v49  ;;  %v489_v52 = vld [vmem:[%s1557_s29 + $0x288] sm:$0xff]  ;;  %v514_v28 = vld [vmem:[%s1557_s29 + $0x350] sm:$0xff] }
  0x8d   : > { %577 = vmatpush.msra.mxu1 %v488_v50  ;;  %597 = vmatpush.msra.mxu2 %v425_v51  ;;  %v420_v53 = vld [vmem:[%s1557_s29 + $0x60] sm:$0xff]  ;;  %v421_v55 = vld [vmem:[%s1557_s29 + $0x68] sm:$0xff]  ;;  %v451_v29 = vld [vmem:[%s1557_s29 + $0x158] sm:$0xff] }
  0x8e   : > { %617 = vmatpush.msra.mxu3 %v489_v52  ;;  %v484_v54 = vld [vmem:[%s1557_s29 + $0x260] sm:$0xff]  ;;  %558 = vmatpush.msra.mxu0 %v420_v53  ;;  %v485_v56 = vld [vmem:[%s1557_s29 + $0x268] sm:$0xff]  ;;  %v515_v30 = vld [vmem:[%s1557_s29 + $0x358] sm:$0xff] }
  0x8f   : > { %578 = vmatpush.msra.mxu1 %v484_v54  ;;  %598 = vmatpush.msra.mxu2 %v421_v55  ;;  %v416_v57 = vld [vmem:[%s1557_s29 + $0x40] sm:$0xff]  ;;  %v417_v59 = vld [vmem:[%s1557_s29 + $0x48] sm:$0xff]  ;;  %v446_v31 = vld [vmem:[%s1557_s29 + $0x130] sm:$0xff] }
  0x90   : > { %618 = vmatpush.msra.mxu3 %v485_v56  ;;  %v480_v58 = vld [vmem:[%s1557_s29 + $0x240] sm:$0xff]  ;;  %559 = vmatpush.msra.mxu0 %v416_v57  ;;  %v481_v60 = vld [vmem:[%s1557_s29 + $0x248] sm:$0xff]  ;;  %v510_v32 = vld [vmem:[%s1557_s29 + $0x330] sm:$0xff] }
  0x91   : > { %579 = vmatpush.msra.mxu1 %v480_v58  ;;  %599 = vmatpush.msra.mxu2 %v417_v59  ;;  %v412_v61 = vld [vmem:[%s1557_s29 + $0x20] sm:$0xff]  ;;  %v413_v63 = vld [vmem:[%s1557_s29 + $0x28] sm:$0xff]  ;;  %v447_v33 = vld [vmem:[%s1557_s29 + $0x138] sm:$0xff] }
  0x92   : > { %619 = vmatpush.msra.mxu3 %v481_v60  ;;  %v476_v62 = vld [vmem:[%s1557_s29 + $0x220] sm:$0xff]  ;;  %560 = vmatpush.msra.mxu0 %v412_v61  ;;  %v477_v2 = vld [vmem:[%s1557_s29 + $0x228] sm:$0xff]  ;;  %v511_v34 = vld [vmem:[%s1557_s29 + $0x338] sm:$0xff] }
  0x93   : > { %580 = vmatpush.msra.mxu1 %v476_v62  ;;  %600 = vmatpush.msra.mxu2 %v413_v63  ;;  %v408_v3 = vld [vmem:[%s1557_s29] sm:$0xff]  ;;  %v409_v5 = vld [vmem:[%s1557_s29 + $0x8] sm:$0xff]  ;;  %v442_v36 = vld [vmem:[%s1557_s29 + $0x110] sm:$0xff] }
  0x94   : > { %620 = vmatpush.msra.mxu3 %v477_v2  ;;  %v472_v4 = vld [vmem:[%s1557_s29 + $0x200] sm:$0xff]  ;;  %561 = vmatpush.msra.mxu0 %v408_v3  ;;  %v473_v6 = vld [vmem:[%s1557_s29 + $0x208] sm:$0xff]  ;;  %v506_v37 = vld [vmem:[%s1557_s29 + $0x310] sm:$0xff] }
  0x95   : > { %581 = vmatpush.msra.mxu1 %v472_v4  ;;  %601 = vmatpush.msra.mxu2 %v409_v5  ;;  %v443_v38 = vld [vmem:[%s1557_s29 + $0x118] sm:$0xff]  ;;  %v438_v40 = vld [vmem:[%s1557_s29 + $0xf0] sm:$0xff] }
  0x96   : > { %621 = vmatpush.msra.mxu3 %v473_v6  ;;  %626 = vmatpush.msrb.mxu0 %v470_v7  ;;  %v507_v39 = vld [vmem:[%s1557_s29 + $0x318] sm:$0xff]  ;;  %v502_v41 = vld [vmem:[%s1557_s29 + $0x2f0] sm:$0xff] }
  0x97   : > { %646 = vmatpush.msrb.mxu1 %v534_v8  ;;  %666 = vmatpush.msrb.mxu2 %v471_v9  ;;  %v439_v42 = vld [vmem:[%s1557_s29 + $0xf8] sm:$0xff]  ;;  %v434_v44 = vld [vmem:[%s1557_s29 + $0xd0] sm:$0xff] }
  0x98   : > { %686 = vmatpush.msrb.mxu3 %v535_v10  ;;  %627 = vmatpush.msrb.mxu0 %v466_v11  ;;  %v503_v43 = vld [vmem:[%s1557_s29 + $0x2f8] sm:$0xff]  ;;  %v498_v45 = vld [vmem:[%s1557_s29 + $0x2d0] sm:$0xff] }
  0x99   : > { %647 = vmatpush.msrb.mxu1 %v530_v12  ;;  %667 = vmatpush.msrb.mxu2 %v467_v13  ;;  %v435_v46 = vld [vmem:[%s1557_s29 + $0xd8] sm:$0xff]  ;;  %v430_v48 = vld [vmem:[%s1557_s29 + $0xb0] sm:$0xff] }
  0x9a   : > { %687 = vmatpush.msrb.mxu3 %v531_v14  ;;  %628 = vmatpush.msrb.mxu0 %v462_v15  ;;  %v499_v47 = vld [vmem:[%s1557_s29 + $0x2d8] sm:$0xff]  ;;  %v494_v49 = vld [vmem:[%s1557_s29 + $0x2b0] sm:$0xff] }
  0x9b   : > { %648 = vmatpush.msrb.mxu1 %v526_v16  ;;  %668 = vmatpush.msrb.mxu2 %v463_v17  ;;  %v431_v51 = vld [vmem:[%s1557_s29 + $0xb8] sm:$0xff]  ;;  %v426_v54 = vld [vmem:[%s1557_s29 + $0x90] sm:$0xff] }
  0x9c   : > { %688 = vmatpush.msrb.mxu3 %v527_v18  ;;  %629 = vmatpush.msrb.mxu0 %v458_v19  ;;  %v495_v52 = vld [vmem:[%s1557_s29 + $0x2b8] sm:$0xff]  ;;  %v490_v55 = vld [vmem:[%s1557_s29 + $0x290] sm:$0xff] }
  0x9d   : > { %649 = vmatpush.msrb.mxu1 %v522_v20  ;;  %669 = vmatpush.msrb.mxu2 %v459_v21  ;;  %v427_v56 = vld [vmem:[%s1557_s29 + $0x98] sm:$0xff]  ;;  %v422_v60 = vld [vmem:[%s1557_s29 + $0x70] sm:$0xff] }
  0x9e   : > { %689 = vmatpush.msrb.mxu3 %v523_v22  ;;  %630 = vmatpush.msrb.mxu0 %v454_v23  ;;  %v491_v57 = vld [vmem:[%s1557_s29 + $0x298] sm:$0xff]  ;;  %v486_v61 = vld [vmem:[%s1557_s29 + $0x270] sm:$0xff] }
  0x9f   : > { %650 = vmatpush.msrb.mxu1 %v518_v24  ;;  %670 = vmatpush.msrb.mxu2 %v455_v25  ;;  %v423_v62 = vld [vmem:[%s1557_s29 + $0x78] sm:$0xff]  ;;  %v418_v2 = vld [vmem:[%s1557_s29 + $0x50] sm:$0xff] }
  0xa0   : > { %690 = vmatpush.msrb.mxu3 %v519_v26  ;;  %631 = vmatpush.msrb.mxu0 %v450_v27  ;;  %v487_v63 = vld [vmem:[%s1557_s29 + $0x278] sm:$0xff]  ;;  %v482_v3 = vld [vmem:[%s1557_s29 + $0x250] sm:$0xff] }
  0xa1   : > { %651 = vmatpush.msrb.mxu1 %v514_v28  ;;  %671 = vmatpush.msrb.mxu2 %v451_v29  ;;  %v419_v5 = vld [vmem:[%s1557_s29 + $0x58] sm:$0xff]  ;;  %v414_v7 = vld [vmem:[%s1557_s29 + $0x30] sm:$0xff] }
  0xa2   : > { %691 = vmatpush.msrb.mxu3 %v515_v30  ;;  %632 = vmatpush.msrb.mxu0 %v446_v31  ;;  %v483_v6 = vld [vmem:[%s1557_s29 + $0x258] sm:$0xff]  ;;  %v478_v8 = vld [vmem:[%s1557_s29 + $0x230] sm:$0xff] }
  0xa3   : > { %652 = vmatpush.msrb.mxu1 %v510_v32  ;;  %672 = vmatpush.msrb.mxu2 %v447_v33  ;;  %v415_v9 = vld [vmem:[%s1557_s29 + $0x38] sm:$0xff]  ;;  %v410_v12 = vld [vmem:[%s1557_s29 + $0x10] sm:$0xff]  ;;  %v725_v33 = vld [vmem:[%s1567_s3 + $0x78] sm:$0xff] }
  0xa4   : > { %692 = vmatpush.msrb.mxu3 %v511_v34  ;;  %633 = vmatpush.msrb.mxu0 %v442_v36  ;;  %v479_v10 = vld [vmem:[%s1557_s29 + $0x238] sm:$0xff]  ;;  %v474_v13 = vld [vmem:[%s1557_s29 + $0x210] sm:$0xff]  ;;  %v741_v34 = vld [vmem:[%s1567_s3 + $0xf8] sm:$0xff] }
  0xa5   : > { %653 = vmatpush.msrb.mxu1 %v506_v37  ;;  %673 = vmatpush.msrb.mxu2 %v443_v38  ;;  %v411_v14 = vld [vmem:[%s1557_s29 + $0x18] sm:$0xff]  ;;  %v773_v36 = vld [vmem:[%s1567_s3 + $0x1f8] sm:$0xff] }
  0xa6   : > { %693 = vmatpush.msrb.mxu3 %v507_v39  ;;  %634 = vmatpush.msrb.mxu0 %v438_v40  ;;  %v475_v15 = vld [vmem:[%s1557_s29 + $0x218] sm:$0xff]  ;;  %v739_v40 = vld [vmem:[%s1567_s3 + $0xe8] sm:$0xff] }
  0xa7   : > { %654 = vmatpush.msrb.mxu1 %v502_v41  ;;  %674 = vmatpush.msrb.mxu2 %v439_v42  ;;  %v724_v37 = vld [vmem:[%s1567_s3 + $0x70] sm:$0xff]  ;;  %v755_v41 = vld [vmem:[%s1567_s3 + $0x168] sm:$0xff] }
  0xa8   : > { %694 = vmatpush.msrb.mxu3 %v503_v43  ;;  %635 = vmatpush.msrb.mxu0 %v434_v44  ;;  %v740_v38 = vld [vmem:[%s1567_s3 + $0xf0] sm:$0xff]  ;;  %v771_v42 = vld [vmem:[%s1567_s3 + $0x1e8] sm:$0xff]  ;;  %v722_v43 = vld [vmem:[%s1567_s3 + $0x60] sm:$0xff] }
  0xa9   : > { %655 = vmatpush.msrb.mxu1 %v498_v45  ;;  %675 = vmatpush.msrb.mxu2 %v435_v46  ;;  %v772_v39 = vld [vmem:[%s1567_s3 + $0x1f0] sm:$0xff]  ;;  %v738_v44 = vld [vmem:[%s1567_s3 + $0xe0] sm:$0xff] }
  0xaa   : > { %695 = vmatpush.msrb.mxu3 %v499_v47  ;;  %636 = vmatpush.msrb.mxu0 %v430_v48  ;;  %v754_v45 = vld [vmem:[%s1567_s3 + $0x160] sm:$0xff]  ;;  %v721_v47 = vld [vmem:[%s1567_s3 + $0x58] sm:$0xff] }
  0xab   : > { %656 = vmatpush.msrb.mxu1 %v494_v49  ;;  %676 = vmatpush.msrb.mxu2 %v431_v51  ;;  %v770_v46 = vld [vmem:[%s1567_s3 + $0x1e0] sm:$0xff]  ;;  %v737_v48 = vld [vmem:[%s1567_s3 + $0xd8] sm:$0xff]  ;;  %v720_v51 = vld [vmem:[%s1567_s3 + $0x50] sm:$0xff] }
  0xac   : > { %696 = vmatpush.msrb.mxu3 %v495_v52  ;;  %637 = vmatpush.msrb.mxu0 %v426_v54  ;;  %v753_v49 = vld [vmem:[%s1567_s3 + $0x158] sm:$0xff]  ;;  %v736_v52 = vld [vmem:[%s1567_s3 + $0xd0] sm:$0xff]  ;;  %v719_v54 = vld [vmem:[%s1567_s3 + $0x48] sm:$0xff] }
  0xad   : > { %657 = vmatpush.msrb.mxu1 %v490_v55  ;;  %677 = vmatpush.msrb.mxu2 %v427_v56  ;;  %v735_v55 = vld [vmem:[%s1567_s3 + $0xc8] sm:$0xff] }
  0xae   : > { %697 = vmatpush.msrb.mxu3 %v491_v57  ;;  %638 = vmatpush.msrb.mxu0 %v422_v60  ;;  %v751_v56 = vld [vmem:[%s1567_s3 + $0x148] sm:$0xff]  ;;  %v718_v57 = vld [vmem:[%s1567_s3 + $0x40] sm:$0xff]  ;;  %v717_v60 = vld [vmem:[%s1567_s3 + $0x38] sm:$0xff] }
  0xaf   : > { %658 = vmatpush.msrb.mxu1 %v486_v61  ;;  %678 = vmatpush.msrb.mxu2 %v423_v62  ;;  %v733_v61 = vld [vmem:[%s1567_s3 + $0xb8] sm:$0xff]  ;;  %v716_v62 = vld [vmem:[%s1567_s3 + $0x30] sm:$0xff] }
  0xb0   : > { %698 = vmatpush.msrb.mxu3 %v487_v63  ;;  %639 = vmatpush.msrb.mxu0 %v418_v2  ;;  %v715_v63 = vld [vmem:[%s1567_s3 + $0x28] sm:$0xff]  ;;  %v714_v2 = vld [vmem:[%s1567_s3 + $0x20] sm:$0xff] }
  0xb1   : > { %659 = vmatpush.msrb.mxu1 %v482_v3  ;;  %679 = vmatpush.msrb.mxu2 %v419_v5  ;;  %v713_v3 = vld [vmem:[%s1567_s3 + $0x18] sm:$0xff] }
  0xb2   : > { %699 = vmatpush.msrb.mxu3 %v483_v6  ;;  %640 = vmatpush.msrb.mxu0 %v414_v7  ;;  %v749_v5 = vld [vmem:[%s1567_s3 + $0x138] sm:$0xff]  ;;  %v768_v6 = vld [vmem:[%s1567_s3 + $0x1d0] sm:$0xff] }
  0xb3   : > { %660 = vmatpush.msrb.mxu1 %v478_v8  ;;  %680 = vmatpush.msrb.mxu2 %v415_v9  ;;  %v712_v7 = vld [vmem:[%s1567_s3 + $0x10] sm:$0xff]  ;;  %v731_v8 = vld [vmem:[%s1567_s3 + $0xa8] sm:$0xff] }
  0xb4   : > { %700 = vmatpush.msrb.mxu3 %v479_v10  ;;  %641 = vmatpush.msrb.mxu0 %v410_v12  ;;  %v748_v9 = vld [vmem:[%s1567_s3 + $0x130] sm:$0xff]  ;;  %v767_v10 = vld [vmem:[%s1567_s3 + $0x1c8] sm:$0xff]  ;;  %v730_v12 = vld [vmem:[%s1567_s3 + $0xa0] sm:$0xff] }
  0xb5   : > { %661 = vmatpush.msrb.mxu1 %v474_v13  ;;  %681 = vmatpush.msrb.mxu2 %v411_v14  ;;  %v747_v13 = vld [vmem:[%s1567_s3 + $0x128] sm:$0xff]  ;;  %v766_v14 = vld [vmem:[%s1567_s3 + $0x1c0] sm:$0xff] }
  0xb6   : > { %701 = vmatpush.msrb.mxu3 %v475_v15  ;;  %v710_v15 = vld [vmem:[%s1567_s3] sm:$0xff] }
  0xec   : > { %v1673_v35 = vpop.xlane.xlu0 %377 }
  0xed   : > { %1118 = vrsqrt.f32 %v1673_v35  ;;  %vm386_vm0 = vcmp.eq.f32.partialorder %v1673_v35, inf  ;;  %v389_v17 = vand.u32 2147483648, %v1673_v35  ;;  %vm388_vm1 = vcmp.eq.f32.partialorder %v1673_v35, 0.0 }
  0xf3   : > { %v1119_v50 = vpop.eup %1118 }
  0xf4   : > { %v380_v53 = vmul.f32 %v1119_v50, %v1673_v35 }
  0xf6   : > { %v381_v58 = vmul.f32 %v1119_v50, %v380_v53  ;;  %v752_v53 = vld [vmem:[%s1567_s3 + $0x150] sm:$0xff] }
  0xf8   : > { %v382_v59 = vmul.f32 0.5, %v381_v58  ;;  %v734_v58 = vld [vmem:[%s1567_s3 + $0xc0] sm:$0xff] }
  0xfa   : > { %v383_v4 = vsub.f32 1.5, %v382_v59  ;;  %v750_v59 = vld [vmem:[%s1567_s3 + $0x140] sm:$0xff] }
  0xfc   : > { %v384_v11 = vmul.f32 %v1119_v50, %v383_v4  ;;  %v769_v50 = vld [vmem:[%s1567_s3 + $0x1d8] sm:$0xff]  ;;  %v732_v4 = vld [vmem:[%s1567_s3 + $0xb0] sm:$0xff] }
  0xfe   : > { %v385_v16 = vmul.f32 %v384_v11, %v1673_v35  ;;  %v711_v11 = vld [vmem:[%s1567_s3 + $0x8] sm:$0xff] }
 0x100   : > { %v387_v18 = vsel %vm386_vm0, %v1673_v35, %v385_v16  ;;  %v757_v35 = vld [vmem:[%s1567_s3 + $0x178] sm:$0xff] }
 0x101   : > { %v390_v19 = vsel %vm388_vm1, %v389_v17, %v387_v18  ;;  %v729_v16 = vld [vmem:[%s1567_s3 + $0x98] sm:$0xff]  ;;  %v746_v17 = vld [vmem:[%s1567_s3 + $0x120] sm:$0xff] }
 0x102   : > { %v391_v20 = vmax.f32 %v390_v19, 1e-12  ;;  %v765_v18 = vld [vmem:[%s1567_s3 + $0x1b8] sm:$0xff]  ;;  %v728_v19 = vld [vmem:[%s1567_s3 + $0x90] sm:$0xff] }
 0x104   : > { %1120 = vrcp.f32 %v391_v20  ;;  %v403_v24 = vand.u32 2147483648, %v391_v20  ;;  %v401_v26 = vand.u32 2147483647, %v391_v20  ;;  %vm397_vm3 = vweird.f32 %v391_v20 }
 0x106   : > { %v404_v28 = vor.u32 1.1754944e-38, %v403_v24  ;;  %vm402_vm5 = vcmp.eq.f32.partialorder %v401_v26, 8.507059e+37  ;;  %v763_v24 = vld [vmem:[%s1567_s3 + $0x1a8] sm:$0xff] }
 0x107   : > { %v743_v26 = vld [vmem:[%s1567_s3 + $0x108] sm:$0xff] }
 0x10a   : > { %v1121_v21 = vpop.eup %1120 }
 0x10b   : > { %v393_v22 = vmul.f32 %v1121_v21, %v391_v20  ;;  %vm398_vm2 = vweird.f32 %v1121_v21  ;;  %v745_v20 = vld [vmem:[%s1567_s3 + $0x118] sm:$0xff] }
 0x10c   : > { %vm399_vm4 = vmor %vm397_vm3, %vm398_vm2 }
 0x10d   : > { %v394_v23 = vsub.f32 1.0, %v393_v22  ;;  %v727_v22 = vld [vmem:[%s1567_s3 + $0x88] sm:$0xff] }
 0x10f   : > { %v395_v25 = vmul.f32 %v1121_v21, %v394_v23  ;;  %v744_v23 = vld [vmem:[%s1567_s3 + $0x110] sm:$0xff] }
 0x111   : > { %v396_v27 = vadd.f32 %v1121_v21, %v395_v25  ;;  %v726_v25 = vld [vmem:[%s1567_s3 + $0x80] sm:$0xff] }
 0x113   : > { %v400_v29 = vsel %vm399_vm4, %v1121_v21, %v396_v27  ;;  %v764_v21 = vld [vmem:[%s1567_s3 + $0x1b0] sm:$0xff]  ;;  %v762_v27 = vld [vmem:[%s1567_s3 + $0x1a0] sm:$0xff] }
 0x114   : > { %v405_v30 = vsel %vm402_vm5, %v404_v28, %v400_v29  ;;  %v742_v28 = vld [vmem:[%s1567_s3 + $0x100] sm:$0xff]  ;;  %v761_v29 = vld [vmem:[%s1567_s3 + $0x198] sm:$0xff] }
 0x115   : > { %v406_v31 = vmul.f32 %v405_v30, %v1573_v0  ;;  %v407_v32 = vmul.f32 %v405_v30, %v1575_v1  ;;  %v756_v0 = vld [vmem:[%s1567_s3 + $0x170] sm:$0xff]  ;;  %v723_v1 = vld [vmem:[%s1567_s3 + $0x68] sm:$0xff] }
 0x116   : > { %v760_v30 = vld [vmem:[%s1567_s3 + $0x190] sm:$0xff] }
 0x117   : > { %562 = vmatmul.f32.vlgmr.msra.gmra.mxu0 %v406_v31  ;;  %582 = vmatmul.f32.vlgmr.msra.gmra.mxu1 %v407_v32 }
 0x118   : > { %602 = vmatmul.f32.vlgmr.msra.gmra.mxu2 %v406_v31  ;;  %622 = vmatmul.f32.vlgmr.msra.gmra.mxu3 %v407_v32 }
 0x119   : > { %778 = vmatpush.msra.mxu0 %v725_v33  ;;  %798 = vmatpush.msra.mxu1 %v741_v34  ;;  %v536_v33 = vld [vmem:[%s1565_s17] sm:$0xf] }
 0x11a   : > { %818 = vmatpush.msra.mxu2 %v757_v35  ;;  %838 = vmatpush.msra.mxu3 %v773_v36  ;;  %v538_v34 = vperm.slane %v536_v33, 0 }
 0x11b   : > { %779 = vmatpush.msra.mxu0 %v724_v37  ;;  %799 = vmatpush.msra.mxu1 %v740_v38 }
 0x11c   : > { %819 = vmatpush.msra.mxu2 %v756_v0  ;;  %839 = vmatpush.msra.mxu3 %v772_v39  ;;  %v539_v0 = vperm.slane %v536_v33, 1 }
 0x11d   : > { %780 = vmatpush.msra.mxu0 %v723_v1  ;;  %800 = vmatpush.msra.mxu1 %v739_v40  ;;  %v540_v1 = vperm.slane %v536_v33, 2 }
 0x11e   : > { %820 = vmatpush.msra.mxu2 %v755_v41  ;;  %840 = vmatpush.msra.mxu3 %v771_v42 }
 0x11f   : > { %642 = vmatmul.f32.vlgmr.msrb.gmra.mxu0 %v406_v31  ;;  %662 = vmatmul.f32.vlgmr.msrb.gmra.mxu1 %v407_v32 }
 0x120   : > { %682 = vmatmul.f32.vlgmr.msrb.gmra.mxu2 %v406_v31  ;;  %702 = vmatmul.f32.vlgmr.msrb.gmra.mxu3 %v407_v32  ;;  %v759_v31 = vld [vmem:[%s1567_s3 + $0x188] sm:$0xff]  ;;  %v758_v32 = vld [vmem:[%s1567_s3 + $0x180] sm:$0xff] }
 0x121   : > { %781 = vmatpush.msra.mxu0 %v722_v43  ;;  %801 = vmatpush.msra.mxu1 %v738_v44 }
 0x122   : > { %821 = vmatpush.msra.mxu2 %v754_v45  ;;  %841 = vmatpush.msra.mxu3 %v770_v46 }
 0x123   : > { %782 = vmatpush.msra.mxu0 %v721_v47  ;;  %802 = vmatpush.msra.mxu1 %v737_v48 }
 0x124   : > { %822 = vmatpush.msra.mxu2 %v753_v49  ;;  %842 = vmatpush.msra.mxu3 %v769_v50  ;;  %v541_v49 = vperm.slane %v536_v33, 3 }
 0x125   : > { %783 = vmatpush.msra.mxu0 %v720_v51  ;;  %803 = vmatpush.msra.mxu1 %v736_v52 }
 0x126   : > { %823 = vmatpush.msra.mxu2 %v752_v53  ;;  %843 = vmatpush.msra.mxu3 %v768_v6 }
 0x127   : > { %784 = vmatpush.msra.mxu0 %v719_v54  ;;  %804 = vmatpush.msra.mxu1 %v735_v55 }
 0x128   : > { %824 = vmatpush.msra.mxu2 %v751_v56  ;;  %844 = vmatpush.msra.mxu3 %v767_v10  ;;  %v1117_v56 = vld [vmem:[%s328_s9] ss:$0 sm:$0xff] }
 0x129   : > { %785 = vmatpush.msra.mxu0 %v718_v57  ;;  %805 = vmatpush.msra.mxu1 %v734_v58 }
 0x12a   : > { %825 = vmatpush.msra.mxu2 %v750_v59  ;;  %845 = vmatpush.msra.mxu3 %v766_v14 }
 0x12b   : > { %786 = vmatpush.msra.mxu0 %v717_v60  ;;  %806 = vmatpush.msra.mxu1 %v733_v61 }
 0x12c   : > { %826 = vmatpush.msra.mxu2 %v749_v5  ;;  %846 = vmatpush.msra.mxu3 %v765_v18 }
 0x12d   : > { %787 = vmatpush.msra.mxu0 %v716_v62  ;;  %807 = vmatpush.msra.mxu1 %v732_v4 }
 0x12e   : > { %827 = vmatpush.msra.mxu2 %v748_v9  ;;  %847 = vmatpush.msra.mxu3 %v764_v21 }
 0x12f   : > { %788 = vmatpush.msra.mxu0 %v715_v63  ;;  %808 = vmatpush.msra.mxu1 %v731_v8 }
 0x130   : > { %828 = vmatpush.msra.mxu2 %v747_v13  ;;  %848 = vmatpush.msra.mxu3 %v763_v24 }
 0x131   : > { %789 = vmatpush.msra.mxu0 %v714_v2  ;;  %809 = vmatpush.msra.mxu1 %v730_v12 }
 0x132   : > { %829 = vmatpush.msra.mxu2 %v746_v17  ;;  %849 = vmatpush.msra.mxu3 %v762_v27 }
 0x133   : > { %790 = vmatpush.msra.mxu0 %v713_v3  ;;  %810 = vmatpush.msra.mxu1 %v729_v16 }
 0x134   : > { %830 = vmatpush.msra.mxu2 %v745_v20  ;;  %850 = vmatpush.msra.mxu3 %v761_v29 }
 0x135   : > { %791 = vmatpush.msra.mxu0 %v712_v7  ;;  %811 = vmatpush.msra.mxu1 %v728_v19 }
 0x136   : > { %831 = vmatpush.msra.mxu2 %v744_v23  ;;  %851 = vmatpush.msra.mxu3 %v760_v30 }
 0x137   : > { %792 = vmatpush.msra.mxu0 %v711_v11  ;;  %812 = vmatpush.msra.mxu1 %v727_v22 }
 0x138   : > { %832 = vmatpush.msra.mxu2 %v743_v26  ;;  %852 = vmatpush.msra.mxu3 %v759_v31 }
 0x139   : > { %793 = vmatpush.msra.mxu0 %v710_v15  ;;  %813 = vmatpush.msra.mxu1 %v726_v25 }
 0x13a   : > { %833 = vmatpush.msra.mxu2 %v742_v28  ;;  %853 = vmatpush.msra.mxu3 %v758_v32 }
 0x194   : > { %v563_v35 = vpop.f32.mrf.mxu0  ;;  %v583_v36 = vpop.f32.mrf.mxu1 }
 0x195   : > { %v564_v37 = vadd.f32 %v563_v35, %v538_v34 }
 0x197   : > { %v584_v38 = vadd.f32 %v583_v36, %v564_v37 }
 0x199   : > { %v706_v39 = vmax.f32 %v584_v38, 0.0 }
 0x19b   : > { %v603_v40 = vpop.f32.mrf.mxu2  ;;  %v623_v41 = vpop.f32.mrf.mxu3  ;;  %794 = vmatmul.f32.vlgmr.msra.gmra.mxu0 %v706_v39 }
 0x19c   : > { %v604_v42 = vadd.f32 %v603_v40, %v539_v0  ;;  %v643_v43 = vpop.f32.mrf.mxu0  ;;  %v663_v46 = vpop.f32.mrf.mxu1 }
 0x19d   : > { %v644_v44 = vadd.f32 %v643_v43, %v540_v1 }
 0x19e   : > { %v624_v45 = vadd.f32 %v623_v41, %v604_v42 }
 0x19f   : > { %v664_v47 = vadd.f32 %v663_v46, %v644_v44 }
 0x1a0   : > { %v707_v48 = vmax.f32 %v624_v45, 0.0 }
 0x1a1   : > { %v708_v50 = vmax.f32 %v664_v47, 0.0 }
 0x1a2   : > { %814 = vmatmul.f32.vlgmr.msra.gmra.mxu1 %v707_v48 }
 0x1a3   : > { %v683_v51 = vpop.f32.mrf.mxu2  ;;  %834 = vmatmul.f32.vlgmr.msra.gmra.mxu2 %v708_v50  ;;  %v703_v53 = vpop.f32.mrf.mxu3 }
 0x1a4   : > { %v684_v52 = vadd.f32 %v683_v51, %v541_v49 }
 0x1a6   : > { %v704_v54 = vadd.f32 %v703_v53, %v684_v52 }
 0x1a8   : > { %v709_v55 = vmax.f32 %v704_v54, 0.0 }
 0x1aa   : > { %854 = vmatmul.f32.vlgmr.msra.gmra.mxu3 %v709_v55 }
 0x218   : > { %v795_v57 = vpop.f32.mrf.mxu0 }
 0x219   : > { %v796_v59 = vadd.f32 %v1117_v56, %v795_v57 }
 0x21f   : > { %v815_v58 = vpop.f32.mrf.mxu1 }
 0x220   : > { %v816_v61 = vadd.f32 %v815_v58, %v796_v59 }
 0x226   : > { %v835_v60 = vpop.f32.mrf.mxu2 }
 0x227   : > { %v836_v62 = vadd.f32 %v835_v60, %v816_v61 }
 0x22d   : > { %v855_v63 = vpop.f32.mrf.mxu3 }
 0x22e   : > { %v856_v2 = vadd.f32 %v855_v63, %v836_v62 }
 0x230   : > { %858 = vst [vmem:[%s369_s6] sm:$0xff] %v856_v2 }
 0x231   : > { %1299 = shalt.err (!%p1296_p12)
}
 0x232   : > { %1052 = dma.vmem_to_hbm [thread:$0]  (%p1492_p3), %s873_s14, 128, %s875_s12, %s860_s1  }
 0x233 PF: > { %p1078_p13 = scmp.ge.s32.totalorder %s1346_s21, 2  ;;  %s886_s8 = sand.u32 1, %s1334_s18  }
 0x234   : > { %s887_s24 = scalar_lea.sflag [#allocation4], %s886_s8 }
 0x235   : > { %p1072_p2 = pnand %p1078_p13, %p1496_p4 }
 0x237   : > { %p1073_p6 = pneg %p1072_p2 }
 0x239   : > { %1329 = dma.done.wait (%p1073_p6), %s887_s24, 128  }
 0x23a   : > { %1331 = vsyncadd (%p1073_p6), %s887_s24, 4294967168  ;;  %s1841_s17 = sld [smem:[#allocation16_spill]]  ;;  %p22_p0 = scmp.ge.s32.totalorder %s1405_s22, 10  }
 0x23b   : > { %s1842_s20 = sld [smem:[#allocation17_spill]]  ;;  %s1843_s18 = smov %s1338_s19 }
 0x23c   : > { %s1845_s21 = smov %s1405_s22  ;;  %24 = sbr.rel (!%p22_p0) target bundleno = 12 (0xc), region = 125 }
 0x240   : > { %s1844_s19 = smov %s1841_s17 }
 0x241   :  { %893 = vsyncpa [#allocation3], 1 }
 0x242   :  { %895 = vsyncpa [#allocation3 + $0x1], 1 }
 0x243   :  { %896 = vsyncpa [#allocation6], 1 }
 0x244   :  { %898 = vsyncpa [#allocation6 + $0x1], 1 }
 0x245   :  { %899 = vsyncpa [#allocation9], 1 }
 0x246   :  { %901 = vsyncpa [#allocation9 + $0x1], 1 }
 0x247   :  { %902 = vsyncpa [#allocation4], 1 }
 0x248   :  { %904 = vsyncpa [#allocation4 + $0x1], 1 }

</bundles_post_ra>
